<compile_context>
chip_gen: v7x
topology: tpu7x:2x2x1
jax: 0.10.0
libtpu: 0.0.40
codegen_flags: <defaults>
</compile_context>

<pallas_src>
import jax
import jax.numpy as jnp
from jax.experimental import pallas as pl
from jax.experimental.pallas import tpu as pltpu


_VMEM_LIMIT_BYTES = 48 << 20   # safe on v7x (64 MiB physical), roomy on v5e/v6e


# --------------------------------------------------------------------------
# Buffer construction (mirrors SPE.__init__ with positions == zeros)
# --------------------------------------------------------------------------
def make_pe(seq_len: int, mod_dim: int) -> jnp.ndarray:
    # div_term kept for fidelity; numerically irrelevant since positions == 0.
    div_term = jnp.exp(
        jnp.arange(0, mod_dim, 2, dtype=jnp.float32)
        * (-jnp.log10(jnp.float32(1000.0))) / jnp.float32(mod_dim)
    )
    zero_arg = jnp.float32(0.0) * div_term[0]
    pe = jnp.zeros((seq_len, mod_dim), jnp.float32)
    pe = pe.at[0::2, :].set(jnp.sin(zero_arg))   # even rows -> 0
    pe = pe.at[1::2, :].set(jnp.cos(zero_arg))   # odd rows  -> 1
    return pe


# --------------------------------------------------------------------------
# Kernels (pure HBM-streaming broadcast add)
# --------------------------------------------------------------------------
def _add_rows_kernel(x_ref, pe_ref, o_ref):
    # x_ref/o_ref: (1, TL, D); pe_ref: (TL, D) broadcast over the batch dim.
    o_ref[...] = (x_ref[...] + pe_ref[...]).astype(o_ref.dtype)


def _add_row_flat_kernel(x_ref, pe_ref, o_ref):
    # x_ref/o_ref: (TR, D); pe_ref: (1, D) broadcast over all rows.
    o_ref[...] = (x_ref[...] + pe_ref[...]).astype(o_ref.dtype)


# --------------------------------------------------------------------------
# Tile-size selection: largest multiple-of-8 divisor of `total_rows` whose
# (tile, width) block stays under `target_bytes`; full extent as fallback
# (a full-extent block is always a legal BlockSpec shape).
# --------------------------------------------------------------------------
def _pick_row_tile(total_rows: int, row_bytes: int, target_bytes: int = 2 << 20) -> int:
    max_rows = max(8, target_bytes // max(1, row_bytes))
    best = None
    for t in range(8, min(total_rows, max_rows) + 1, 8):
        if total_rows % t == 0:
            best = t
    return best if best is not None else total_rows


# --------------------------------------------------------------------------
# Forward wrapper
# --------------------------------------------------------------------------
def spe_forward(x: jnp.ndarray, pe: jnp.ndarray) -> jnp.ndarray:
    """Forward: x + pe[x.shape[1]:], broadcast over batch."""
    B, L, D = x.shape
    seq_len, Dp = pe.shape
    assert Dp == D, "pe model dim must match x"
    Lp = seq_len - L
    # PyTorch broadcasting of (B, L, D) + (Lp, D) requires Lp in {1, L}.
    assert Lp in (1, L), "pe[x.size(1):] must broadcast against x"

    if pe.dtype != x.dtype:
        pe = pe.astype(x.dtype)
    itemsize = jnp.dtype(x.dtype).itemsize
    row_bytes = D * itemsize

    if Lp == 1:
        # Single pe row broadcast over every (b, l): flatten to a lane-dense
        # (B*L, D) slab and stream large row tiles; pe row is resident.
        R = B * L
        x2 = x.reshape(R, D)
        pe_row = jax.lax.slice(pe, (L, 0), (L + 1, D))      # (1, D), trivial
        TR = _pick_row_tile(R, row_bytes)
        out2 = pl.pallas_call(
            _add_row_flat_kernel,
            out_shape=jax.ShapeDtypeStruct((R, D), x.dtype),
            grid_spec=pltpu.PrefetchScalarGridSpec(
                num_scalar_prefetch=0,
                grid=(R // TR,),
                in_specs=[
                    pl.BlockSpec((TR, D), lambda r: (r, 0)),
                    pl.BlockSpec((1, D), lambda r: (0, 0)),   # fetched once
                ],
                out_specs=pl.BlockSpec((TR, D), lambda r: (r, 0)),
            ),
            compiler_params=pltpu.CompilerParams(
                dimension_semantics=("parallel",),
                vmem_limit_bytes=_VMEM_LIMIT_BYTES,
            ),
        )(x2, pe_row)
        return out2.reshape(B, L, D)

    # ---- Lp == L (seq_len == 2*L): tile the sequence, batch innermost. ----
    if L % 8 == 0:
        TL = _pick_row_tile(L, row_bytes)        # multiple of 8, divides L
        nL = L // TL
        pe_in = pe                                # full buffer; offset in index_map
        pe_off = L // TL                          # tail = blocks [L//TL, 2L//TL)
    else:
        # L not sublane-aligned: only full-extent blocks are legal, so take
        # the tail once in the wrapper (small, one-time) and use it whole.
        TL, nL = L, 1
        pe_in = jax.lax.slice(pe, (L, 0), (2 * L, D))
        pe_off = 0

    return pl.pallas_call(
        _add_rows_kernel,
        out_shape=jax.ShapeDtypeStruct((B, L, D), x.dtype),
        grid_spec=pltpu.PrefetchScalarGridSpec(
            num_scalar_prefetch=0,
            grid=(nL, B),                         # L-tiles outer, batch inner
            in_specs=[
                pl.BlockSpec((1, TL, D), lambda l, b: (b, l, 0)),
                pl.BlockSpec((TL, D), lambda l, b: (pe_off + l, 0)),  # b-independent
            ],
            out_specs=pl.BlockSpec((1, TL, D), lambda l, b: (b, l, 0)),
        ),
        compiler_params=pltpu.CompilerParams(
            dimension_semantics=("parallel", "parallel"),
            vmem_limit_bytes=_VMEM_LIMIT_BYTES,
        ),
    )(x, pe_in)


if __name__ == "__main__":
    mod_dim = 32
    B = 2

    # Case 1: seq_len = 2*L -> pe tail has L rows, broadcast over batch.
    seq_len, L = 16, 8
    pe = make_pe(seq_len, mod_dim)
    x = jax.random.normal(jax.random.PRNGKey(0), (B, L, mod_dim), dtype=jnp.float32)
    out = jax.block_until_ready(spe_forward(x, pe))
    ref = x + pe[L:][None, :, :]
    assert out.shape == (B, L, mod_dim)
    assert jnp.allclose(out, ref, atol=1e-6), "mismatch vs reference (Lp == L)"

    # Case 2: seq_len = L + 1 -> single-row pe tail, flattened lane-dense path.
    seq_len2, L2 = 9, 8
    pe2 = make_pe(seq_len2, mod_dim)
    x2 = jax.random.normal(jax.random.PRNGKey(1), (B, L2, mod_dim), dtype=jnp.float32)
    out2 = jax.block_until_ready(spe_forward(x2, pe2))
    ref2 = x2 + pe2[L2:][None, :, :]
    assert jnp.allclose(out2, ref2, atol=1e-6), "mismatch vs reference (Lp == 1)"

    print("KERNEL_OK")
</pallas_src>

<mosaic_0001>
module attributes {stable_mosaic.version = 11 : i64} {
  func.func @_add_rows_kernel(%arg0: i32, %arg1: i32, %arg2: memref<1x8x32xf32, #tpu.memory_space<vmem>>, %arg3: memref<8x32xf32, #tpu.memory_space<vmem>>, %arg4: memref<1x8x32xf32, #tpu.memory_space<vmem>>) attributes {dimension_semantics = [#tpu.dimension_semantics<parallel>, #tpu.dimension_semantics<parallel>], iteration_bounds = array<i64: 1, 2>, scalar_prefetch = 0 : i64, scratch_operands = 0 : i64, tpu.core_type = #tpu.core_type<tc>, window_params = [{transform_indices = @transform_0, window_bounds = array<i64: 1, 8, 32>}, {transform_indices = @transform_1, window_bounds = array<i64: 8, 32>}, {transform_indices = @transform_2, window_bounds = array<i64: 1, 8, 32>}]} {
    %c0 = arith.constant 0 : index
    %c0_0 = arith.constant 0 : index
    %c0_1 = arith.constant 0 : index
    %0 = vector.load %arg2[%c0, %c0_0, %c0_1] : memref<1x8x32xf32, #tpu.memory_space<vmem>>, vector<1x8x32xf32>
    %c0_2 = arith.constant 0 : index
    %c0_3 = arith.constant 0 : index
    %1 = vector.load %arg3[%c0_2, %c0_3] : memref<8x32xf32, #tpu.memory_space<vmem>>, vector<8x32xf32>
    %2 = vector.shape_cast %1 : vector<8x32xf32> to vector<1x8x32xf32>
    %3 = arith.addf %0, %2 : vector<1x8x32xf32>
    %c0_4 = arith.constant 0 : index
    %c0_5 = arith.constant 0 : index
    %c0_6 = arith.constant 0 : index
    %4 = vector.load %arg4[%c0_4, %c0_5, %c0_6] : memref<1x8x32xf32, #tpu.memory_space<vmem>>, vector<1x8x32xf32>
    tpu.vector_store %arg4[%c0_4, %c0_5, %c0_6], %3 {strides = array<i32>} : memref<1x8x32xf32, #tpu.memory_space<vmem>>, vector<1x8x32xf32>,
    return
  }
  func.func @transform_0(%arg0: i32, %arg1: i32) -> (i32, i32, i32) {
    %c0_i32 = arith.constant 0 : i32
    %c0_i32_0 = arith.constant 0 : i32
    return %arg1, %arg0, %c0_i32 : i32, i32, i32
  }
  func.func @transform_1(%arg0: i32, %arg1: i32) -> (i32, i32) {
    %c1_i32 = arith.constant 1 : i32
    %0 = arith.addi %c1_i32, %arg0 : i32
    %c0_i32 = arith.constant 0 : i32
    %c0_i32_0 = arith.constant 0 : i32
    return %0, %c0_i32 : i32, i32
  }
  func.func @transform_2(%arg0: i32, %arg1: i32) -> (i32, i32, i32) {
    %c0_i32 = arith.constant 0 : i32
    %c0_i32_0 = arith.constant 0 : i32
    return %arg1, %arg0, %c0_i32 : i32, i32, i32
  }
}

</mosaic_0001>

<bundles_post_ra>
// kernel: tpu_custom_call.1
= control target key start
LH: loop header
LB: loop body
LE: loop exit
PB: predicated region body
PF: predicated region fallthrough
CT: control target
= control target key end

     0   :  { %7 = vsyncpa [#allocation3], 0  ;;  %s785_s0 = inlined_call_operand.hbm [shape: f32[2,8,32], index: 0, kind: input, shape index: {}]   ;;  %s786_s1 = inlined_call_operand.hbm [shape: f32[16,32], index: 1, kind: input, shape index: {}]   ;;  %s787_s2 = inlined_call_operand.hbm [shape: f32[2,8,32], index: 2, kind: output, shape index: {}]  }
   0x1   :  { %9 = vsyncpa [#allocation3 + $0x1], 0 }
   0x2   :  { %10 = vsyncpa [#allocation6], 0 }
   0x3   :  { %11 = vsyncpa [#allocation4], 0 }
   0x4   :  { %13 = vsyncpa [#allocation4 + $0x1], 0  ;;  %s568_s9 = smov 0   ;;  %s570_s10 = smov 0  }
   0x5   :  { %s572_s11 = smov 0   ;;  %s574_s12 = smov 0  }
   0x6   :  { %s576_s13 = smov 0   ;;  %s578_s14 = smov 0  }
   0x7 LB: > { %s313_s15 = sadd.s32 4294967295, %s548_s14   ;;  %s314_s16 = sadd.s32 4294967294, %s548_s14   ;;  %s548_s14 = sphi %s578_s14, %s19_s14   ;;  %s544_s13 = sphi %s576_s13, %s814_s13   ;;  %s540_s12 = sphi %s574_s12, %s813_s12   ;;  %s536_s11 = sphi %s572_s11, %s812_s11   ;;  %s532_s10 = sphi %s570_s10, %s811_s10   ;;  %s528_s9 = sphi %s568_s9, %s810_s9  }
   0x8   : > { %p53_p0 = scmp.ne.s32.totalorder %s532_s10, %s528_s9  ;;  %p602_p1 = scmp.eq.s32.totalorder %s313_s15, 0 }
   0x9   : > { %p606_p2 = scmp.eq.s32.totalorder %s313_s15, 1  ;;  %p113_p3 = scmp.eq.s32.totalorder %s314_s16, 1 }
   0xa   : > { %s793_s17 = scalar_select %p602_p1, 1, 0 }
   0xb   : > { %s794_s18 = scalar_select %p606_p2, 1, 0 }
   0xc   : > { %p612_p4 = por %p602_p1, %p53_p0  ;;  %p315_p5 = scmp.ge.s32.totalorder %s548_s14, 1 }
   0xd   : > { %p617_p6 = por %p113_p3, %p53_p0  ;;  %p120_p7 = scmp.lt.s32.totalorder %s548_s14, 3 }
   0xe   : > { %s795_s19 = scalar_select %p612_p4, 1, 0 }
   0xf   : > { %s796_s20 = scalar_select %p617_p6, 1, 0 }
  0x10   : > { %s625_s23 = scalar_lea.hbm %s786_s1, 128  ;;  %p627_p8 = pnand %p315_p5, %p120_p7 }
  0x11   : > { %s550_s25 = smov [#allocation5]   ;;  %s28_s28 = sadd.s32 1, %s544_s13 }
  0x12   : > { %s797_s24 = scalar_select %p627_p8, 1, 0 }
  0x13   : > { %s136_s26 = sshll.u32 %s550_s25, 4  ;;  %p336_p10 = pneg %p627_p8  ;;  %s137_s26 = int_to_ptr.vmem [resolvable:$true] %s136_s26 }
  0x14   : > { %p641_p12 = scmp.ge.s32.totalorder %s28_s28, 2  ;;  %s431_s4 = scalar_lea.hbm %s786_s1, 256 }
  0x15   : > { %p636_p11 = pnand %p336_p10, %p602_p1  ;;  %p402_p13 = scmp.ne.s32.totalorder %s625_s23, %s431_s4 }
  0x16   : > { %s799_s29 = scalar_select %p641_p12, 1, 0 }
  0x17   : > { %s798_s27 = scalar_select %p636_p11, 1, 0 }
  0x18   : > { %p403_p0 = pneg %p636_p11  ;;  %p407_p7 = scmp.lt.u32.totalorder %s625_s23, %s786_s1 }
  0x19   : > { %p408_p10 = scmp.lt.u32.totalorder %s431_s4, %s431_s4  ;;  %p410_p6 = scmp.lt.u32.totalorder %s431_s4, %s625_s23 }
  0x1a   : > { %p404_p3 = pnand %p403_p0, %p402_p13 }
  0x1b   : > { %p409_p9 = por %p408_p10, %p407_p7 }
  0x1c   : > { %p405_p5 = pneg %p404_p3 }
  0x1d   : > { %p411_p1 = por %p410_p6, %p409_p9 }
  0x1f   : > { %p412_p4 = pnand %p411_p1, %p405_p5 }
  0x21   : > { %415 = shalt.err (!%p412_p4)
}
  0x22   : > { %s416_s7 = scalar_lea.vmem %s137_s26, 128  ;;  %p424_p11 = scmp.lt.s32.totalorder %s137_s26, %s137_s26 }
  0x23   : > { %p417_p8 = scmp.ne.s32.totalorder %s137_s26, %s416_s7  ;;  %p425_p13 = scmp.lt.s32.totalorder %s416_s7, %s416_s7 }
  0x25   : > { %p419_p2 = pnand %p417_p8, %p403_p0  ;;  %p426_p3 = por %p425_p13, %p424_p11 }
  0x27   : > { %p420_p12 = pneg %p419_p2 }
  0x29   : > { %p427_p7 = pnand %p426_p3, %p420_p12 }
  0x2b   : > { %430 = shalt.err (!%p427_p7)
}
  0x2c   : > { %p800_p10 = scmp.ne.s32.totalorder %s798_s27, 0  ;;  %p801_p1 = scmp.ne.s32.totalorder %s799_s29, 0 }
  0x2d   : > { %s40_s8 = sadd.s32 1, %s536_s11  ;;  %p47_p2 = scmp.ne.s32.totalorder %s536_s11, %s532_s10 }
  0x2e   : > { %339 = dma.hbm_to_vmem [thread:$0]  (!%p800_p10), %s625_s23, 128, %s137_s26, [#allocation6]  }
  0x2f   : > { %s816_s28 = smov (%p801_p1, %s28_s28), 0  ;;  %p48_p4 = scmp.eq.s32.totalorder %s548_s14, 0 }
  0x30   : > { %s35_s15 = ssub.s32 %s544_s13, %s816_s28  ;;  %p802_p8 = scmp.ne.s32.totalorder %s794_s18, 0 }
  0x31   : > { %p38_p6 = scmp.eq.s32.totalorder %s35_s15, 0  ;;  %p49_p11 = por %p48_p4, %p47_p2 }
  0x32   : > { %p671_p9 = por %p802_p8, %p47_p2  ;;  %p349_p12 = scmp.lt.s32.totalorder %s548_s14, 2 }
  0x33   : > { %s677_s21 = scalar_select %p38_p6, %s536_s11, %s40_s8  }
  0x34   : > { %s147_s22 = sand.u32 1, %s536_s11   ;;  %s319_s23 = sshll.u32 %s544_s13, 7 }
  0x35   : > { %s318_s25 = sshll.u32 %s147_s22, 3  ;;  %s684_s29 = scalar_lea.hbm %s785_s0, %s319_s23 }
  0x36   : > { %s151_s18 = scalar_lea.vmem [#allocation2], %s318_s25  ;;  %p686_p0 = pnand %p349_p12, %p49_p11 }
  0x37   : > { %s159_s30 = sshll.u32 %s151_s18, 4  ;;  %s148_s4 = scalar_lea.sflag [#allocation3], %s147_s22  ;;  %s690_s30 = int_to_ptr.vmem [resolvable:$true] %s159_s30 }
  0x38   : > { %s432_s5 = scalar_lea.hbm %s684_s29, 128  ;;  %p434_p13 = pneg %p686_p0 }
  0x39   : > { %p433_p5 = scmp.ne.s32.totalorder %s684_s29, %s432_s5  ;;  %s437_s8 = scalar_lea.hbm %s785_s0, 256 }
  0x3a   : > { %p438_p10 = scmp.lt.u32.totalorder %s684_s29, %s785_s0  ;;  %p439_p1 = scmp.lt.u32.totalorder %s437_s8, %s432_s5 }
  0x3b   : > { %p435_p3 = pnand %p434_p13, %p433_p5  ;;  %p441_p4 = scmp.lt.u32.totalorder %s432_s5, %s684_s29 }
  0x3c   : > { %p440_p2 = por %p439_p1, %p438_p10 }
  0x3d   : > { %p436_p7 = pneg %p435_p3 }
  0x3e   : > { %p442_p6 = por %p441_p4, %p440_p2 }
  0x40   : > { %p443_p8 = pnand %p442_p6, %p436_p7 }
  0x42   : > { %446 = shalt.err (!%p443_p8)
}
  0x43   : > { %s447_s22 = scalar_lea.vmem %s690_s30, 128  ;;  %s551_s25 = smov [#allocation2]  }
  0x44   : > { %p448_p11 = scmp.ne.s32.totalorder %s690_s30, %s447_s22  ;;  %s452_s26 = sshll.u32 %s551_s25, 4  ;;  %s453_s26 = int_to_ptr.vmem [resolvable:$false] %s452_s26 }
  0x45   : > { %s454_s27 = scalar_lea.vmem %s453_s26, 256  ;;  %p455_p3 = scmp.lt.s32.totalorder %s690_s30, %s453_s26 }
  0x46   : > { %p450_p12 = pnand %p448_p11, %p434_p13  ;;  %p456_p10 = scmp.lt.s32.totalorder %s454_s27, %s447_s22 }
  0x48   : > { %p451_p5 = pneg %p450_p12  ;;  %p457_p1 = por %p456_p10, %p455_p3 }
  0x4a   : > { %p458_p2 = pnand %p457_p1, %p451_p5 }
  0x4c   : > { %461 = shalt.err (!%p458_p2)
}
  0x4d   : > { %343 = dma.hbm_to_vmem [thread:$0]  (!%p686_p0), %s684_s29, 128, %s690_s30, %s148_s4  }
  0x4e   : > { %p805_p7 = scmp.ne.s32.totalorder %s797_s24, 0 }
  0x4f   : > { %s720_s18 = sand.u32 (!%p805_p7), 1, %s532_s10   ;;  %p806_p13 = scmp.ne.s32.totalorder (!%p805_p7), %s795_s19, 0 }
  0x50   : > { %168 = sbr.rel (%p805_p7) target bundleno = 116 (0x74), region = 28  ;;  %s321_s5 = sshll.u32 (!%p805_p7), %s720_s18, 3 }
  0x51   : > { %s171_s6 = scalar_lea.sflag (!%p805_p7), [#allocation3], %s720_s18  ;;  %s174_s7 = scalar_lea.vmem (!%p805_p7), [#allocation2], %s321_s5 }
  0x57   : > { %515 = dma.done.wait (%p806_p13), %s171_s6, 128  }
  0x58   : > { %517 = vsyncadd (%p806_p13), %s171_s6, 4294967168  ;;  %p807_p4 = scmp.ne.s32.totalorder %s793_s17, 0 }
  0x5a   : > { %519 = dma.done.wait (%p807_p4), [#allocation6], 128  }
  0x5b   : > { %521 = vsyncadd (%p807_p4), [#allocation6], 4294967168  ;;  %s198_s24 = scalar_lea.vmem [#allocation7], %s321_s5  ;;  %s325_s30 = sshll.u32 %s540_s12, 7  ;;  %v200_v0 = vld [vmem:[%s174_s7] sm:$0xff]  ;;  %v201_v1 = vld [vmem:[#allocation5] sm:$0xff] }
  0x5c   : > { %s220_s29 = sshll.u32 %s198_s24, 4  ;;  %vm203_vm0 = vcmask 261120   ;;  %v202_v2 = vadd.f32 %v201_v1, %v200_v0  ;;  %s738_s17 = scalar_lea.hbm %s787_s2, %s325_s30  ;;  %s733_s29 = int_to_ptr.vmem [resolvable:$true] %s220_s29 }
  0x5d   : > { %s206_s4 = scalar_lea.sflag [#allocation4], %s720_s18  ;;  %s462_s8 = scalar_lea.vmem %s733_s29, 128 }
  0x5e   : > { %204 = vst.msk [vmem:[%s198_s24] sm:$0xff] %vm203_vm0, %v202_v2  ;;  %p463_p0 = scmp.ne.s32.totalorder %s733_s29, %s462_s8  ;;  %s552_s12 = smov [#allocation7]  }
  0x5f   : > { %s466_s15 = sshll.u32 %s552_s12, 4  ;;  %s467_s15 = int_to_ptr.vmem [resolvable:$false] %s466_s15 }
  0x60   : > { %p464_p6 = pnand %p463_p0, %p671_p9  ;;  %s468_s23 = scalar_lea.vmem %s467_s15, 256 }
  0x61   : > { %p469_p11 = scmp.lt.s32.totalorder %s733_s29, %s467_s15  ;;  %p470_p12 = scmp.lt.s32.totalorder %s468_s23, %s462_s8 }
  0x62   : > { %p465_p8 = pneg %p464_p6 }
  0x63   : > { %p471_p5 = por %p470_p12, %p469_p11 }
  0x65   : > { %p472_p3 = pnand %p471_p5, %p465_p8 }
  0x67   : > { %475 = shalt.err (!%p472_p3)
}
  0x68   : > { %s476_s22 = scalar_lea.hbm %s738_s17, 128  ;;  %s480_s27 = scalar_lea.hbm %s787_s2, 256 }
  0x69   : > { %p477_p10 = scmp.ne.s32.totalorder %s738_s17, %s476_s22  ;;  %p481_p7 = scmp.lt.u32.totalorder %s738_s17, %s787_s2 }
  0x6a   : > { %p482_p13 = scmp.lt.u32.totalorder %s480_s27, %s476_s22  ;;  %p484_p0 = scmp.lt.u32.totalorder %s476_s22, %s738_s17 }
  0x6b   : > { %p478_p1 = pnand %p477_p10, %p671_p9 }
  0x6c   : > { %p483_p4 = por %p482_p13, %p481_p7 }
  0x6d   : > { %p479_p2 = pneg %p478_p1 }
  0x6e   : > { %p485_p6 = por %p484_p0, %p483_p4 }
  0x70   : > { %p486_p8 = pnand %p485_p6, %p479_p2 }
  0x72   : > { %489 = shalt.err (!%p486_p8)
}
  0x73   : > { %334 = dma.vmem_to_hbm [thread:$0]  (%p671_p9), %s733_s29, 128, %s738_s17, %s206_s4  }
  0x74 PF: > { %s232_s6 = sand.u32 1, %s528_s9   ;;  %p808_p11 = scmp.ne.s32.totalorder %s796_s20, 0 }
  0x75   : > { %p809_p12 = scmp.ge.s32.totalorder %s548_s14, 2  ;;  %s233_s7 = scalar_lea.sflag [#allocation4], %s232_s6 }
  0x77   : > { %p345_p5 = pnand %p809_p12, %p808_p11 }
  0x79   : > { %523 = dma.done.wait (!%p345_p5), %s233_s7, 128  }
  0x7a   : > { %525 = vsyncadd (!%p345_p5), %s233_s7, 4294967168  ;;  %s19_s14 = sadd.s32 1, %s548_s14   ;;  %s810_s9 = smov %s532_s10 }
  0x7b   : > { %p16_p3 = scmp.ge.s32.totalorder %s19_s14, 4   ;;  %s811_s10 = smov %s536_s11 }
  0x7c   : > { %s812_s11 = smov %s677_s21  ;;  %s813_s12 = smov %s544_s13 }
  0x7d   : > { %s814_s13 = smov %s816_s28  ;;  %18 = sbr.rel (!%p16_p3) target bundleno = 7 (0x7), region = 78 }
  0x84   :  { %238 = vsyncpa [#allocation3], 1 }
  0x85   :  { %240 = vsyncpa [#allocation3 + $0x1], 1 }
  0x86   :  { %241 = vsyncpa [#allocation6], 1 }
  0x87   :  { %242 = vsyncpa [#allocation4], 1 }
  0x88   :  { %244 = vsyncpa [#allocation4 + $0x1], 1 }

</bundles_post_ra>
